<compile_context>
chip_gen: v5e
topology: v5e:2x2
jax: 0.10.0
libtpu: 0.0.40
codegen_flags: <defaults>
</compile_context>

<pallas_src>
import functools

import jax
import jax.numpy as jnp
from jax.experimental import pallas as pl
from jax.experimental.pallas import tpu as pltpu


# ----------------------------------------------------------------------------
# Pallas kernel
# ----------------------------------------------------------------------------
def affine_a_kernel(w_ref, wt_ref, b_ref, scale_ref, bias_ref):
    """One row-tile of AffineA: style = leaky_relu(w @ Wt + b, 0.2); split."""
    # (Bt, w_len) @ (w_len, 2*zc) on the MXU, f32 accumulation.
    style = jnp.dot(w_ref[...], wt_ref[...],
                    preferred_element_type=jnp.float32)
    style = style + b_ref[...]                       # broadcast (1, 2*zc)
    style = jnp.where(style >= 0.0, style, 0.2 * style)   # leaky_relu(0.2)

    zc = scale_ref.shape[-1]
    scale_ref[...] = style[:, :zc].astype(scale_ref.dtype)
    bias_ref[...] = style[:, zc:].astype(bias_ref.dtype)


# ----------------------------------------------------------------------------
# Parameter init (mirrors FC.__init__ semantics) + one-time layout prep
# ----------------------------------------------------------------------------
def init_affine_a_params(key, w_length, z_channel,
                         gain=2 ** 0.5, use_wscale=False, lrmul=1.0):
    he_std = gain * w_length ** (-0.5)
    if use_wscale:
        init_std = 1.0 / lrmul
        w_lrmul = he_std * lrmul
    else:
        init_std = he_std / lrmul
        w_lrmul = lrmul
    b_lrmul = lrmul

    # PyTorch layout: weight (out=2*zc, in=w_length), bias (2*zc,)
    weight = jax.random.normal(key, (2 * z_channel, w_length),
                               jnp.float32) * init_std
    bias = jnp.zeros((2 * z_channel,), jnp.float32)

    # Fold the forward-time lrmul scaling and the transpose ONCE here so the
    # kernel never touches `.T` (perf feedback): Wt is (w_length, 2*zc).
    wt = (weight * w_lrmul).T
    b = (bias * b_lrmul).reshape(1, 2 * z_channel)
    return {"wt": wt, "b": b, "z_channel": z_channel}


# ----------------------------------------------------------------------------
# Wrapper
# ----------------------------------------------------------------------------
def _row_block(batch):
    # Whole batch if small; otherwise 256-row (sublane-aligned) tiles so the
    # input stream pipelines and VMEM stays bounded at large batch.
    return batch if batch <= 256 else 256


@functools.partial(jax.jit, static_argnames=())
def affine_a_forward(params, w):
    """AffineA.forward(w) -> (scale, bias), each (B, z_channel)."""
    wt = params["wt"]                 # (w_length, 2*zc)
    b = params["b"]                   # (1, 2*zc)
    bsz, w_len = w.shape
    two_zc = wt.shape[1]
    zc = two_zc // 2

    bt = _row_block(bsz)
    grid = (pl.cdiv(bsz, bt),)

    scale, bias = pl.pallas_call(
        affine_a_kernel,
        out_shape=(jax.ShapeDtypeStruct((bsz, zc), jnp.float32),
                   jax.ShapeDtypeStruct((bsz, zc), jnp.float32)),
        grid=grid,
        in_specs=[
            pl.BlockSpec((bt, w_len), lambda i: (i, 0)),      # w row tile
            pl.BlockSpec((w_len, two_zc), lambda i: (0, 0)),  # full Wt
            pl.BlockSpec((1, two_zc), lambda i: (0, 0)),      # full bias row
        ],
        out_specs=(pl.BlockSpec((bt, zc), lambda i: (i, 0)),
                   pl.BlockSpec((bt, zc), lambda i: (i, 0))),
        compiler_params=pltpu.CompilerParams(
            dimension_semantics=("parallel",)),
    )(w, wt, b)
    return scale, bias


# ----------------------------------------------------------------------------
if __name__ == "__main__":
    # Small shapes consistent with the module: batch=8 (sublane-aligned),
    # w_length=32, z_channel=4  ->  scale/bias each (8, 4).
    B, W_LEN, ZC = 8, 32, 4

    key = jax.random.PRNGKey(0)
    k_params, k_w = jax.random.split(key)

    params = init_affine_a_params(k_params, W_LEN, ZC)
    w_in = jax.random.normal(k_w, (B, W_LEN), jnp.float32)

    scale, bias = affine_a_forward(params, w_in)
    jax.block_until_ready((scale, bias))

    # Pure-JAX reference of the same forward semantics.
    style = w_in @ params["wt"] + params["b"]
    style = jnp.where(style >= 0.0, style, 0.2 * style)
    ref_scale, ref_bias = style[:, :ZC], style[:, ZC:]

    assert scale.shape == (B, ZC) and bias.shape == (B, ZC)
    assert jnp.allclose(scale, ref_scale, atol=1e-5, rtol=1e-5)
    assert jnp.allclose(bias, ref_bias, atol=1e-5, rtol=1e-5)
    print("KERNEL_OK")
</pallas_src>

<mosaic_0001>
module attributes {stable_mosaic.version = 11 : i64} {
  func.func @affine_a_kernel(%arg0: i32, %arg1: memref<8x32xf32, #tpu.memory_space<vmem>>, %arg2: memref<32x8xf32, #tpu.memory_space<vmem>>, %arg3: memref<1x8xf32, #tpu.memory_space<vmem>>, %arg4: memref<8x4xf32, #tpu.memory_space<vmem>>, %arg5: memref<8x4xf32, #tpu.memory_space<vmem>>) attributes {dimension_semantics = [#tpu.dimension_semantics<parallel>], iteration_bounds = array<i64: 1>, scalar_prefetch = 0 : i64, scratch_operands = 0 : i64, tpu.core_type = #tpu.core_type<tc>, window_params = [{transform_indices = @transform_0, window_bounds = array<i64: 8, 32>}, {pipeline_mode = #tpu.pipeline_mode<synchronous>, transform_indices = @transform_1, window_bounds = array<i64: 32, 8>}, {pipeline_mode = #tpu.pipeline_mode<synchronous>, transform_indices = @transform_2, window_bounds = array<i64: 1, 8>}, {transform_indices = @transform_3, window_bounds = array<i64: 8, 4>}, {transform_indices = @transform_4, window_bounds = array<i64: 8, 4>}]} {
    %c0 = arith.constant 0 : index
    %c0_0 = arith.constant 0 : index
    %0 = vector.load %arg1[%c0, %c0_0] : memref<8x32xf32, #tpu.memory_space<vmem>>, vector<8x32xf32>
    %c0_1 = arith.constant 0 : index
    %c0_2 = arith.constant 0 : index
    %1 = vector.load %arg2[%c0_1, %c0_2] : memref<32x8xf32, #tpu.memory_space<vmem>>, vector<32x8xf32>
    %cst = arith.constant dense<0.000000e+00> : vector<8x8xf32>
    %2 = tpu.matmul %0, %1, %cst {dimension_numbers = #tpu.dot_dimension_numbers<[1], [0], [0], [1], [0, 0, 1, 1], [], []>} : vector<8x32xf32>, vector<32x8xf32>, vector<8x8xf32> -> vector<8x8xf32>
    %c0_3 = arith.constant 0 : index
    %c0_4 = arith.constant 0 : index
    %3 = vector.load %arg3[%c0_3, %c0_4] : memref<1x8xf32, #tpu.memory_space<vmem>>, vector<1x8xf32>
    %4 = vector.broadcast %3 : vector<1x8xf32> to vector<8x8xf32>
    %5 = arith.addf %2, %4 : vector<8x8xf32>
    %cst_5 = arith.constant 0.000000e+00 : f32
    %6 = vector.broadcast %cst_5 : f32 to vector<8x8xf32>
    %7 = arith.cmpf oge, %5, %6 : vector<8x8xf32>
    %cst_6 = arith.constant 2.000000e-01 : f32
    %8 = vector.broadcast %cst_6 : f32 to vector<8x8xf32>
    %9 = arith.mulf %8, %5 : vector<8x8xf32>
    %10 = arith.select %7, %5, %9 : vector<8x8xi1>, vector<8x8xf32>
    %11 = vector.extract_strided_slice %10 {offsets = [0, 0], sizes = [8, 4], strides = [1, 1]} : vector<8x8xf32> to vector<8x4xf32>
    %c0_7 = arith.constant 0 : index
    %c0_8 = arith.constant 0 : index
    %12 = vector.load %arg4[%c0_7, %c0_8] : memref<8x4xf32, #tpu.memory_space<vmem>>, vector<8x4xf32>
    tpu.vector_store %arg4[%c0_7, %c0_8], %11 {strides = array<i32>} : memref<8x4xf32, #tpu.memory_space<vmem>>, vector<8x4xf32>,
    %13 = vector.extract_strided_slice %10 {offsets = [0, 4], sizes = [8, 4], strides = [1, 1]} : vector<8x8xf32> to vector<8x4xf32>
    %c0_9 = arith.constant 0 : index
    %c0_10 = arith.constant 0 : index
    %14 = vector.load %arg5[%c0_9, %c0_10] : memref<8x4xf32, #tpu.memory_space<vmem>>, vector<8x4xf32>
    tpu.vector_store %arg5[%c0_9, %c0_10], %13 {strides = array<i32>} : memref<8x4xf32, #tpu.memory_space<vmem>>, vector<8x4xf32>,
    return
  }
  func.func @transform_0(%arg0: i32) -> (i32, i32) {
    %c0_i32 = arith.constant 0 : i32
    %c0_i32_0 = arith.constant 0 : i32
    return %arg0, %c0_i32 : i32, i32
  }
  func.func @transform_1(%arg0: i32) -> (i32, i32) {
    %c0_i32 = arith.constant 0 : i32
    %c0_i32_0 = arith.constant 0 : i32
    %c0_i32_1 = arith.constant 0 : i32
    return %c0_i32, %c0_i32_0 : i32, i32
  }
  func.func @transform_2(%arg0: i32) -> (i32, i32) {
    %c0_i32 = arith.constant 0 : i32
    %c0_i32_0 = arith.constant 0 : i32
    %c0_i32_1 = arith.constant 0 : i32
    return %c0_i32, %c0_i32_0 : i32, i32
  }
  func.func @transform_3(%arg0: i32) -> (i32, i32) {
    %c0_i32 = arith.constant 0 : i32
    %c0_i32_0 = arith.constant 0 : i32
    return %arg0, %c0_i32 : i32, i32
  }
  func.func @transform_4(%arg0: i32) -> (i32, i32) {
    %c0_i32 = arith.constant 0 : i32
    %c0_i32_0 = arith.constant 0 : i32
    return %arg0, %c0_i32 : i32, i32
  }
}

</mosaic_0001>

<bundles_post_ra>
// kernel: affine_a_forward.1
= control target key start
LH: loop header
LB: loop body
LE: loop exit
PB: predicated region body
PF: predicated region fallthrough
CT: control target
= control target key end

     0   :  { %vm25_vm0 = vcmask 261120   ;;  %vm52_vm2 = vcmask 31744   ;;  %s70_s28 = smov 124   ;;  %s120_s1 = inlined_call_operand.vmem [shape: f32[32,8], index: 1, kind: input, shape index: {}]   ;;  %s121_s2 = inlined_call_operand.vmem [shape: f32[1,8], index: 2, kind: input, shape index: {}]   ;;  %s122_s0 = inlined_call_operand.vmem [shape: f32[8,32], index: 0, kind: input, shape index: {}]   ;;  %s123_s3 = inlined_call_operand.vmem [shape: f32[8,4], index: 3, kind: output, shape index: {0}]   ;;  %s124_s4 = inlined_call_operand.vmem [shape: f32[8,4], index: 4, kind: output, shape index: {1}]  }
   0x1   :  { %v20_v0 = vld [vmem:[%s120_s1 + $0x18] sm:$0xff]  ;;  %v19_v1 = vld [vmem:[%s120_s1 + $0x10] sm:$0xff]  ;;  %v18_v2 = vld [vmem:[%s120_s1 + $0x8] sm:$0xff] }
   0x2   :  { %41 = vmatpush.msra.mxu0 %v20_v0  ;;  %v17_v3 = vld [vmem:[%s120_s1] sm:$0xff] }
   0x3   :  { %v16_v4 = vld [vmem:[%s122_s0] sm:$0xff] }
   0x4   :  { %42 = vmatpush.msra.mxu0 %v19_v1  ;;  %v69_v5 = vld [vmem:[%s121_s2] ss:$0 sm:$0xff] }
   0x6   :  { %43 = vmatpush.msra.mxu0 %v18_v2 }
   0x8   :  { %44 = vmatpush.msra.mxu0 %v17_v3 }
   0x9   :  { %67 = vmatmul.msk.f32.vlgmr.msra.gmra.mxu0 %vm25_vm0, %v16_v4 }
  0x86   :  { %v46_v6 = vpop.f32.mrf.mxu0 }
  0x87   :  { %v47_v7 = vadd.f32 %v69_v5, %v46_v6 }
  0x89   :  { %vm49_vm1 = vcmp.ge.f32.partialorder %v47_v7, 0.0  ;;  %v50_v8 = vmul.f32 0.2, %v47_v7 }
  0x8b   :  { %v51_v9 = vsel %vm49_vm1, %v47_v7, %v50_v8 }
  0x8c   :  { %53 = vst.msk [vmem:[%s123_s3] sm:$0xff] %vm52_vm2, %v51_v9  ;;  %55 = vrot.lane.b32.xlu0 %v51_v9, %s70_s28 }
  0xfe   :  { %v56_v10 = vpop.permute.xlu0 %55 }
  0xff   :  { %58 = vst.msk [vmem:[%s124_s4] sm:$0xff] %vm52_vm2, %v56_v10 }

</bundles_post_ra>
